<compile_context>
chip_gen: v6e
topology: v6e:2x2x1
jax: 0.10.0
libtpu: 0.0.40
codegen_flags: <defaults>
</compile_context>

<pallas_src>
import functools

import jax
import jax.numpy as jnp
from jax.experimental import pallas as pl
from jax.experimental.pallas import tpu as pltpu

_LANE = 128


def _round_up(x, m):
    return ((x + m - 1) // m) * m


def _cnn_kernel(x_ref, w1_ref, b1_ref, w2_ref, b2_ref, o_ref, gmax_ref, *,
                seq_len, tile_rows):
    # x_ref   : (TL, C_in)  bf16 row tile of one batch's sequence
    # w1_ref  : (C_in, F)   bf16 Conv1d(k=1) weight (pre-transposed)
    # b1_ref  : (1, F)      f32 Conv1d bias
    # w2_ref  : (F, Op)     f32 Linear weight (pre-transposed, lane-padded)
    # b2_ref  : (1, Op)     f32 Linear bias (lane-padded)
    # o_ref   : (1, 1, Op)  f32 lane-dense output block for this batch
    # gmax_ref: (1, F)      f32 running max over the sequence (VMEM scratch)
    l = pl.program_id(1)
    num_l = pl.num_programs(1)

    @pl.when(l == 0)
    def _init():
        gmax_ref[...] = jnp.full_like(gmax_ref, -jnp.inf)

    # Conv1d(kernel_size=1) == per-row matmul; bf16 inputs, f32 accumulation.
    h = jnp.dot(x_ref[...], w1_ref[...], preferred_element_type=jnp.float32)
    h = jnp.tanh(h + b1_ref[...])
    # MaxPool1d(kernel_size=1, stride=1) is the identity.
    h = jnp.maximum(h, 0.0)                                   # relu

    if seq_len % tile_rows != 0:
        # Mask rows past the true sequence length (partial last tile) with
        # -inf so they cannot corrupt the global max.
        row = l * tile_rows + jax.lax.broadcasted_iota(
            jnp.int32, (tile_rows, 1), 0)
        h = jnp.where(row < seq_len, h, -jnp.inf)

    # AdaptiveMaxPool1d(1): fold this tile's sublane max into the running max.
    gmax_ref[...] = jnp.maximum(gmax_ref[...],
                                jnp.max(h, axis=0, keepdims=True))

    @pl.when(l == num_l - 1)
    def _finalize():
        g = jnp.maximum(gmax_ref[...], 0.0)                   # relu
        out = jnp.dot(g, w2_ref[...],
                      preferred_element_type=jnp.float32) + b2_ref[...]
        o_ref[...] = jnp.tanh(out).reshape(o_ref.shape)


def pack_params(conv_w, conv_b, lin_w, lin_b):
    """Pack / pre-transpose the weights once, outside the per-call hot path.

    conv_w: (F, C_in, 1)  PyTorch Conv1d weight layout
    conv_b: (F,)
    lin_w : (O, F)        PyTorch Linear weight layout
    lin_b : (O,)
    """
    F, c_in, k = conv_w.shape
    assert k == 1, "only kernel_size=1 Conv1d is supported"
    O = lin_w.shape[0]
    Op = _round_up(O, _LANE)                                   # lane-dense output
    w1 = conv_w[:, :, 0].T.astype(jnp.bfloat16)                # (C_in, F)
    b1 = conv_b.reshape(1, F).astype(jnp.float32)
    w2 = jnp.pad(lin_w.T.astype(jnp.float32), ((0, 0), (0, Op - O)))  # (F, Op)
    b2 = jnp.pad(lin_b.astype(jnp.float32).reshape(1, O), ((0, 0), (0, Op - O)))
    return w1, b1, w2, b2, O


def cnn_model_forward(x, packed, *, tile_rows=512):
    """x: (B, L, C_in). Returns (B, O) float32."""
    w1, b1, w2, b2, O = packed
    B, L, c_in = x.shape
    F = w1.shape[1]
    Op = w2.shape[1]

    # Stream x as bf16: halves HBM traffic on the only large tensor.
    x = x.astype(jnp.bfloat16)

    tl = min(_round_up(tile_rows, 8), _round_up(L, 8))
    num_l = pl.cdiv(L, tl)

    # Only raise the scoped VMEM limit if very large row tiles are requested
    # (double-buffered x tiles approaching the 32 MiB default); cap below
    # v7x's 64 MiB physical VMEM.
    extra = {}
    x_tile_bytes = tl * c_in * 2
    if 2 * x_tile_bytes > (16 << 20):
        extra["vmem_limit_bytes"] = min(4 * x_tile_bytes + (8 << 20), 64 << 20)

    kernel = functools.partial(_cnn_kernel, seq_len=L, tile_rows=tl)
    out = pl.pallas_call(
        kernel,
        out_shape=jax.ShapeDtypeStruct((B, 1, Op), jnp.float32),
        grid_spec=pltpu.PrefetchScalarGridSpec(
            num_scalar_prefetch=0,
            grid=(B, num_l),
            in_specs=[
                pl.BlockSpec((pl.Squeezed(), tl, c_in), lambda b, l: (b, l, 0)),
                pl.BlockSpec((c_in, F), lambda b, l: (0, 0)),
                pl.BlockSpec((1, F), lambda b, l: (0, 0)),
                pl.BlockSpec((F, Op), lambda b, l: (0, 0)),
                pl.BlockSpec((1, Op), lambda b, l: (0, 0)),
            ],
            out_specs=pl.BlockSpec((1, 1, Op), lambda b, l: (b, 0, 0)),
            scratch_shapes=[pltpu.VMEM((1, F), jnp.float32)],
        ),
        compiler_params=pltpu.CompilerParams(
            dimension_semantics=("parallel", "arbitrary"), **extra),
    )(x, w1, b1, w2, b2)
    return out[:, 0, :O]


def _reference_forward(x, conv_w, conv_b, lin_w, lin_b):
    # Pure-JAX reference mirroring the PyTorch module exactly.
    out = jnp.transpose(x, (0, 2, 1))                          # (B, C_in, L)
    out = jnp.einsum("bcl,fc->bfl", out, conv_w[:, :, 0]) + conv_b[None, :, None]
    out = jnp.tanh(out)
    out = jax.nn.relu(out)                                     # maxpool(k=1) = identity
    out = jnp.max(out, axis=2)                                 # AdaptiveMaxPool1d(1).squeeze()
    out = jax.nn.relu(out)
    out = out @ lin_w.T + lin_b
    return jnp.tanh(out)


if __name__ == "__main__":
    # config: input_size=8, cnn_filter=16 (forced by Linear in_features=16),
    #         output_size=4.
    C_IN, F, O = 8, 16, 4

    key = jax.random.PRNGKey(0)
    kx1, kx2, kw1, kb1, kw2, kb2 = jax.random.split(key, 6)
    conv_w = jax.random.normal(kw1, (F, C_IN, 1), dtype=jnp.float32) * 0.1
    conv_b = jax.random.normal(kb1, (F,), dtype=jnp.float32) * 0.1
    lin_w = jax.random.normal(kw2, (O, F), dtype=jnp.float32) * 0.1
    lin_b = jax.random.normal(kb2, (O,), dtype=jnp.float32) * 0.1

    packed = pack_params(conv_w, conv_b, lin_w, lin_b)

    def check(x, tile_rows):
        out = cnn_model_forward(x, packed, tile_rows=tile_rows)
        out = jax.block_until_ready(out)
        # Like-for-like reference: same bf16-rounded x / conv weight, f32 math.
        x_bf = x.astype(jnp.bfloat16).astype(jnp.float32)
        cw_bf = conv_w.astype(jnp.bfloat16).astype(jnp.float32)
        ref = _reference_forward(x_bf, cw_bf, conv_b, lin_w, lin_b)
        assert out.shape == ref.shape, (out.shape, ref.shape)
        err = jnp.max(jnp.abs(out - ref))
        assert jnp.allclose(out, ref, atol=1e-3, rtol=1e-3), f"mismatch, max err {err}"

    # Case 1: multi-tile sequence with a partial (masked) last L tile.
    x1 = jax.random.normal(kx1, (2, 200, C_IN), dtype=jnp.float32)
    check(x1, tile_rows=128)

    # Case 2: tiny sequence (single tile per batch), matches the toy config.
    x2 = jax.random.normal(kx2, (2, 8, C_IN), dtype=jnp.float32)
    check(x2, tile_rows=512)

    print("KERNEL_OK")
</pallas_src>

<mosaic_0001>
module attributes {stable_mosaic.version = 11 : i64} {
  func.func @_cnn_kernel(%arg0: i32, %arg1: i32, %arg2: memref<1x128x8xbf16, #tpu.memory_space<vmem>>, %arg3: memref<8x16xbf16, #tpu.memory_space<vmem>>, %arg4: memref<1x16xf32, #tpu.memory_space<vmem>>, %arg5: memref<16x128xf32, #tpu.memory_space<vmem>>, %arg6: memref<1x128xf32, #tpu.memory_space<vmem>>, %arg7: memref<1x1x128xf32, #tpu.memory_space<vmem>>, %arg8: memref<1x16xf32, #tpu.memory_space<vmem>>) attributes {dimension_semantics = [#tpu.dimension_semantics<parallel>, #tpu.dimension_semantics<arbitrary>], iteration_bounds = array<i64: 2, 2>, scalar_prefetch = 0 : i64, scratch_operands = 1 : i64, tpu.core_type = #tpu.core_type<tc>, window_params = [{transform_indices = @transform_0, window_bounds = array<i64: 1, 128, 8>}, {pipeline_mode = #tpu.pipeline_mode<synchronous>, transform_indices = @transform_1, window_bounds = array<i64: 8, 16>}, {pipeline_mode = #tpu.pipeline_mode<synchronous>, transform_indices = @transform_2, window_bounds = array<i64: 1, 16>}, {pipeline_mode = #tpu.pipeline_mode<synchronous>, transform_indices = @transform_3, window_bounds = array<i64: 16, 128>}, {pipeline_mode = #tpu.pipeline_mode<synchronous>, transform_indices = @transform_4, window_bounds = array<i64: 1, 128>}, {transform_indices = @transform_5, window_bounds = array<i64: 1, 1, 128>}]} {
    %c0_i32 = arith.constant 0 : i32
    %0 = arith.cmpi eq, %arg1, %c0_i32 : i32
    %1 = arith.extui %0 : i1 to i32
    %c0_i32_0 = arith.constant 0 : i32
    %2 = arith.cmpi ne, %1, %c0_i32_0 : i32
    scf.if %2 {
      %cst_15 = arith.constant 0xFF800000 : f32
      %31 = vector.broadcast %cst_15 : f32 to vector<1x16xf32>
      %c0_16 = arith.constant 0 : index
      %c0_17 = arith.constant 0 : index
      %32 = vector.load %arg8[%c0_16, %c0_17] : memref<1x16xf32, #tpu.memory_space<vmem>>, vector<1x16xf32>
      tpu.vector_store %arg8[%c0_16, %c0_17], %31 {strides = array<i32>} : memref<1x16xf32, #tpu.memory_space<vmem>>, vector<1x16xf32>,
    } else {
    }
    %c0 = arith.constant 0 : index
    %c0_1 = arith.constant 0 : index
    %c0_2 = arith.constant 0 : index
    %3 = vector.load %arg2[%c0, %c0_1, %c0_2] : memref<1x128x8xbf16, #tpu.memory_space<vmem>>, vector<1x128x8xbf16>
    %4 = vector.shape_cast %3 : vector<1x128x8xbf16> to vector<128x8xbf16>
    %c0_3 = arith.constant 0 : index
    %c0_4 = arith.constant 0 : index
    %5 = vector.load %arg3[%c0_3, %c0_4] : memref<8x16xbf16, #tpu.memory_space<vmem>>, vector<8x16xbf16>
    %cst = arith.constant dense<0.000000e+00> : vector<128x16xf32>
    %6 = tpu.matmul %4, %5, %cst {dimension_numbers = #tpu.dot_dimension_numbers<[1], [0], [0], [1], [0, 0, 1, 1], [], []>} : vector<128x8xbf16>, vector<8x16xbf16>, vector<128x16xf32> -> vector<128x16xf32>
    %c0_5 = arith.constant 0 : index
    %c0_6 = arith.constant 0 : index
    %7 = vector.load %arg4[%c0_5, %c0_6] : memref<1x16xf32, #tpu.memory_space<vmem>>, vector<1x16xf32>
    %8 = vector.broadcast %7 : vector<1x16xf32> to vector<128x16xf32>
    %9 = arith.addf %6, %8 : vector<128x16xf32>
    %10 = math.tanh %9 : vector<128x16xf32>
    %cst_7 = arith.constant 0.000000e+00 : f32
    %11 = vector.broadcast %cst_7 : f32 to vector<128x16xf32>
    %12 = arith.maximumf %10, %11 : vector<128x16xf32>
    %c128_i32 = arith.constant 128 : i32
    %13 = arith.muli %arg1, %c128_i32 : i32
    %14 = tpu.iota {dimensions = array<i32: 0>} : vector<128x1xi32>
    %15 = vector.broadcast %13 : i32 to vector<128x1xi32>
    %16 = arith.addi %15, %14 : vector<128x1xi32>
    %c200_i32 = arith.constant 200 : i32
    %17 = vector.broadcast %c200_i32 : i32 to vector<128x1xi32>
    %18 = arith.cmpi slt, %16, %17 : vector<128x1xi32>
    %cst_8 = arith.constant 0xFF800000 : f32
    %19 = vector.shape_cast %18 : vector<128x1xi1> to vector<128x1xi1>
    %20 = vector.broadcast %19 : vector<128x1xi1> to vector<128x16xi1>
    %21 = vector.broadcast %cst_8 : f32 to vector<128x16xf32>
    %22 = arith.select %20, %12, %21 : vector<128x16xi1>, vector<128x16xf32>
    %c0_9 = arith.constant 0 : index
    %c0_10 = arith.constant 0 : index
    %23 = vector.load %arg8[%c0_9, %c0_10] : memref<1x16xf32, #tpu.memory_space<vmem>>, vector<1x16xf32>
    %cst_11 = arith.constant dense<0xFF800000> : vector<16xf32>
    %24 = vector.multi_reduction <maximumf>, %22, %cst_11 [0] : vector<128x16xf32> to vector<16xf32>
    %25 = vector.shape_cast %24 : vector<16xf32> to vector<1x16xf32>
    %26 = arith.maximumf %23, %25 : vector<1x16xf32>
    %c0_12 = arith.constant 0 : index
    %c0_13 = arith.constant 0 : index
    %27 = vector.load %arg8[%c0_12, %c0_13] : memref<1x16xf32, #tpu.memory_space<vmem>>, vector<1x16xf32>
    tpu.vector_store %arg8[%c0_12, %c0_13], %26 {strides = array<i32>} : memref<1x16xf32, #tpu.memory_space<vmem>>, vector<1x16xf32>,
    %c1_i32 = arith.constant 1 : i32
    %28 = arith.cmpi eq, %arg1, %c1_i32 : i32
    %29 = arith.extui %28 : i1 to i32
    %c0_i32_14 = arith.constant 0 : i32
    %30 = arith.cmpi ne, %29, %c0_i32_14 : i32
    scf.if %30 {
      %c0_15 = arith.constant 0 : index
      %c0_16 = arith.constant 0 : index
      %31 = vector.load %arg8[%c0_15, %c0_16] : memref<1x16xf32, #tpu.memory_space<vmem>>, vector<1x16xf32>
      %cst_17 = arith.constant 0.000000e+00 : f32
      %32 = vector.broadcast %cst_17 : f32 to vector<1x16xf32>
      %33 = arith.maximumf %31, %32 : vector<1x16xf32>
      %c0_18 = arith.constant 0 : index
      %c0_19 = arith.constant 0 : index
      %34 = vector.load %arg5[%c0_18, %c0_19] : memref<16x128xf32, #tpu.memory_space<vmem>>, vector<16x128xf32>
      %cst_20 = arith.constant dense<0.000000e+00> : vector<1x128xf32>
      %35 = tpu.matmul %33, %34, %cst_20 {dimension_numbers = #tpu.dot_dimension_numbers<[1], [0], [0], [1], [0, 0, 1, 1], [], []>} : vector<1x16xf32>, vector<16x128xf32>, vector<1x128xf32> -> vector<1x128xf32>
      %c0_21 = arith.constant 0 : index
      %c0_22 = arith.constant 0 : index
      %36 = vector.load %arg6[%c0_21, %c0_22] : memref<1x128xf32, #tpu.memory_space<vmem>>, vector<1x128xf32>
      %37 = arith.addf %35, %36 : vector<1x128xf32>
      %38 = math.tanh %37 : vector<1x128xf32>
      %39 = vector.shape_cast %38 : vector<1x128xf32> to vector<1x1x128xf32>
      %c0_23 = arith.constant 0 : index
      %c0_24 = arith.constant 0 : index
      %c0_25 = arith.constant 0 : index
      %40 = vector.load %arg7[%c0_23, %c0_24, %c0_25] : memref<1x1x128xf32, #tpu.memory_space<vmem>>, vector<1x1x128xf32>
      tpu.vector_store %arg7[%c0_23, %c0_24, %c0_25], %39 {strides = array<i32>} : memref<1x1x128xf32, #tpu.memory_space<vmem>>, vector<1x1x128xf32>,
    } else {
    }
    return
  }
  func.func @transform_0(%arg0: i32, %arg1: i32) -> (i32, i32, i32) {
    %c0_i32 = arith.constant 0 : i32
    %c0_i32_0 = arith.constant 0 : i32
    return %arg0, %arg1, %c0_i32 : i32, i32, i32
  }
  func.func @transform_1(%arg0: i32, %arg1: i32) -> (i32, i32) {
    %c0_i32 = arith.constant 0 : i32
    %c0_i32_0 = arith.constant 0 : i32
    %c0_i32_1 = arith.constant 0 : i32
    return %c0_i32, %c0_i32_0 : i32, i32
  }
  func.func @transform_2(%arg0: i32, %arg1: i32) -> (i32, i32) {
    %c0_i32 = arith.constant 0 : i32
    %c0_i32_0 = arith.constant 0 : i32
    %c0_i32_1 = arith.constant 0 : i32
    return %c0_i32, %c0_i32_0 : i32, i32
  }
  func.func @transform_3(%arg0: i32, %arg1: i32) -> (i32, i32) {
    %c0_i32 = arith.constant 0 : i32
    %c0_i32_0 = arith.constant 0 : i32
    %c0_i32_1 = arith.constant 0 : i32
    return %c0_i32, %c0_i32_0 : i32, i32
  }
  func.func @transform_4(%arg0: i32, %arg1: i32) -> (i32, i32) {
    %c0_i32 = arith.constant 0 : i32
    %c0_i32_0 = arith.constant 0 : i32
    %c0_i32_1 = arith.constant 0 : i32
    return %c0_i32, %c0_i32_0 : i32, i32
  }
  func.func @transform_5(%arg0: i32, %arg1: i32) -> (i32, i32, i32) {
    %c0_i32 = arith.constant 0 : i32
    %c0_i32_0 = arith.constant 0 : i32
    %c0_i32_1 = arith.constant 0 : i32
    return %arg0, %c0_i32, %c0_i32_0 : i32, i32, i32
  }
}

</mosaic_0001>

<bundles_post_ra>
// kernel: tpu_custom_call.1
= control target key start
LH: loop header
LB: loop body
LE: loop exit
PB: predicated region body
PF: predicated region fallthrough
CT: control target
= control target key end

     0   :  { %10 = vsyncpa [#allocation4], 0  ;;  %s1411_s0 = inlined_call_operand.vmem [shape: bf16[2,200,8], index: 0, kind: input, shape index: {}]   ;;  %s1412_s1 = inlined_call_operand.vmem [shape: bf16[8,16], index: 1, kind: input, shape index: {}]   ;;  %s1413_s2 = inlined_call_operand.vmem [shape: f32[1,16], index: 2, kind: input, shape index: {}]   ;;  %s1414_s3 = inlined_call_operand.vmem [shape: f32[16,128], index: 3, kind: input, shape index: {}]   ;;  %s1415_s4 = inlined_call_operand.vmem [shape: f32[1,128], index: 4, kind: input, shape index: {}]   ;;  %s1416_s5 = inlined_call_operand.hbm [shape: f32[2,1,128], index: 5, kind: output, shape index: {}]  }
   0x1   :  { %12 = vsyncpa [#allocation4 + $0x1], 0  ;;  %s1126_s18 = smov 0   ;;  %s1128_s19 = smov 0  }
   0x2   :  { %s1130_s20 = smov 0   ;;  %s1132_s21 = smov 0  }
   0x3   :  { %s1134_s22 = smov 0   ;;  %s1136_s23 = smov 0  }
   0x4   :  { %s1138_s24 = smov 0   ;;  %s1140_s25 = smov 0  }
   0x5 LB: > { %s809_s26 = sadd.s32 4294967295, %s1090_s25   ;;  %s810_s27 = sadd.s32 4294967294, %s1090_s25   ;;  %s1090_s25 = sphi %s1140_s25, %s18_s25   ;;  %s1086_s24 = sphi %s1138_s24, %s1426_s24   ;;  %s1082_s23 = sphi %s1136_s23, %s1425_s23   ;;  %s1078_s22 = sphi %s1134_s22, %s1424_s22   ;;  %s1074_s21 = sphi %s1132_s21, %s1423_s21   ;;  %s1070_s20 = sphi %s1130_s20, %s1422_s20   ;;  %s1066_s19 = sphi %s1128_s19, %s1421_s19   ;;  %s1062_s18 = sphi %s1126_s18, %s1420_s18  }
   0x6   : > { %s27_s28 = sadd.s32 1, %s1082_s23  ;;  %s30_s29 = sadd.s32 1, %s1086_s24 }
   0x7   : > { %p28_p0 = scmp.ge.s32.totalorder %s27_s28, 2  ;;  %p159_p1 = scmp.ne.s32.totalorder %s1070_s20, %s1066_s19 }
   0x8   : > { %p160_p2 = scmp.eq.s32.totalorder %s809_s26, 3  ;;  %p165_p4 = scmp.ne.s32.totalorder %s1066_s19, %s1062_s18 }
   0x9   : > { %s1428_s28 = smov (%p28_p0, %s27_s28), 0  ;;  %s1430_s29 = smov (!%p28_p0, %s30_s29), %s1086_s24 }
   0xa   : > { %p1175_p3 = por %p160_p2, %p159_p1  ;;  %p32_p5 = scmp.ge.s32.totalorder %s1430_s29, 2 }
   0xb   : > { %p166_p6 = scmp.eq.s32.totalorder %s810_s27, 3  ;;  %p813_p7 = scmp.ge.s32.totalorder %s1090_s25, 1 }
   0xc   : > { %p217_p8 = scmp.lt.s32.totalorder %s1090_s25, 5  ;;  %s1432_s29 = smov (%p32_p5, %s1430_s29), 0 }
   0xd   : > { %p1185_p9 = por %p166_p6, %p165_p4  ;;  %s146_s7 = ssub.s32 %s1086_s24, %s1432_s29 }
   0xe   : > { %p218_p10 = pnand %p813_p7, %p217_p8  ;;  %s149_s8 = sadd.s32 1, %s1070_s20 }
   0xf   : > { %p147_p11 = scmp.eq.s32.totalorder %s146_s7, 0  ;;  %s250_s10 = sand.u32 (!%p218_p10), 1, %s1066_s19  }
  0x10   : > { %221 = sbr.rel (%p218_p10) target bundleno = 530 (0x212), region = 40  ;;  %s814_s11 = sshll.u32 (!%p218_p10), %s1074_s21, 4 }
  0x11   : > { %s1193_s9 = scalar_select %p147_p11, %s1070_s20, %s149_s8  }
  0x12   : > { %p257_p12 = scmp.lt.s32.totalorder (!%p218_p10), %s1078_s22, 1  ;;  %p259_p13 = scmp.lt.s32.totalorder (!%p218_p10), %s814_s11, 24 }
  0x13   : > { %s1204_s27 = scalar_lea.vmem (!%p218_p10), [#allocation3], %s250_s10  ;;  %p816_p0 = scmp.ne.s32.totalorder (!%p218_p10), %s1074_s21, 0 }
  0x15   : > { %s258_s12 = scalar_select %p257_p12, %s1078_s22, 1 }
  0x16   : > { %s1434_s11 = smov (!%p259_p13, %s814_s11), 24 }
  0x17   : > { %s881_s13 = smul.u32 25, %s258_s12 }
  0x18   : > { %274 = sbr.rel (%p816_p0) target bundleno = 31 (0x1f), region = 44 }
  0x19   : > { %s262_s14 = sadd.s32 %s881_s13, %s1434_s11 }
  0x1a   : > { %s815_s15 = sshll.u32 %s262_s14, 2 }
  0x1b   : > { %s264_s26 = scalar_lea.vmem %s1411_s0, %s815_s15 }
  0x1d   : > { %vm275_vm0 = vcmask 122880   ;;  %v1092_v0 = vmov -inf  }
  0x1e   : > { %276 = vst.msk [vmem:[#allocation2] sm:$0x1] %vm275_vm0, %v1092_v0 }
  0x1f PF: > { %v293_v1 = vld [vmem:[%s1412_s1] sm:$0xf]  ;;  %vm366_vm1 = vcmask 1043456   ;;  %vm341_vm2 = vcmask 64512   ;;  %v958_v5 = vld [vmem:[%s264_s26 + $0x8] sm:$0xff]   ;;  %v960_v7 = vld [vmem:[%s264_s26 + $0x10] sm:$0xff]   ;;  %v500_v11 = vlaneseq }
  0x20   : > { %v956_v2 = vld [vmem:[%s264_s26] sm:$0xff]   ;;  %879 = vmatprep.subr.msk.bf16.mxu0 %vm366_vm1, %v293_v1  ;;  %880 = vmatprep.subr.msk.bf16.mxu1 %vm366_vm1, %v293_v1  ;;  %v368_v3 = vsel %vm366_vm1, %v293_v1, 0  ;;  %v959_v6 = vld [vmem:[%s264_s26 + $0x28] sm:$0xff]   ;;  %v961_v8 = vld [vmem:[%s264_s26 + $0x30] sm:$0xff]   ;;  %s834_s13 = sshll.u32 %s1074_s21, 7  ;;  %vm599_vm5 = vcmask 130048  }
  0x21   : > { %853 = vmatpush3.bf16.msra.mxu0 %v368_v3  ;;  %878 = vmatpush3.bf16.msra.mxu1 %v368_v3  ;;  %v957_v4 = vld [vmem:[%s264_s26 + $0x20] sm:$0xff]   ;;  %v962_v9 = vld [vmem:[%s264_s26 + $0x18] sm:$0xff]   ;;  %v1224_v15 = vshrl.u32 %v500_v11, 7  ;;  %v1232_v26 = vstv %s834_s13  ;;  %p835_p1 = scmp.ne.s32.totalorder %s1074_s21, 1 }
  0x22   : > { %854 = vmatprep.mubr.msk.bf16.mxu0 %vm341_vm2, %v956_v2  ;;  %862 = vmatprep.mubr.msk.bf16.mxu1 %vm341_vm2, %v957_v4  ;;  %v963_v10 = vld [vmem:[%s264_s26 + $0x38] sm:$0xff]   ;;  %v1221_v12 = vld [vmem:[%s1413_s2] ss:$0 sm:$0xff] }
  0x23   : > { %v503_v23 = vadd.s32 16, %v1224_v15  ;;  %v511_v31 = vadd.s32 80, %v1224_v15  ;;  %v509_v35 = vadd.s32 64, %v1224_v15  ;;  %v1245_v38 = vadd.s32 %v1232_v26, %v1224_v15 }
  0x24   : > { %855 = vmatmul.mubr.msk.bf16.vlgmr.msra.gmra.mxu0 %vm341_vm2, %v958_v5  ;;  %863 = vmatmul.mubr.msk.bf16.vlgmr.msra.gmra.mxu1 %vm341_vm2, %v959_v6  ;;  %v504_v39 = vadd.s32 24, %v1224_v15  ;;  %v512_v42 = vadd.s32 88, %v1224_v15  ;;  %v502_v46 = vadd.s32 8, %v1224_v15  ;;  %v510_v50 = vadd.s32 72, %v1224_v15 }
  0x25   : > { %858 = vmatprep.mubr.msk.bf16.mxu0 %vm341_vm2, %v960_v7  ;;  %866 = vmatprep.mubr.msk.bf16.mxu1 %vm341_vm2, %v961_v8  ;;  %v1239_v34 = vadd.s32 %v1232_v26, %v503_v23  ;;  %v1252_v45 = vadd.s32 %v1232_v26, %v511_v31  ;;  %v1258_v49 = vadd.s32 %v1232_v26, %v509_v35  ;;  %vm534_vm4 = vcmp.lt.s32.totalorder %v1245_v38, 200 }
  0x26   : > { %v1264_v53 = vadd.s32 %v1232_v26, %v504_v39  ;;  %v507_v54 = vadd.s32 48, %v1224_v15  ;;  %v515_v57 = vadd.s32 112, %v1224_v15  ;;  %v505_v58 = vadd.s32 32, %v1224_v15 }
  0x27   : > { %vm536_vm3 = vcmp.lt.s32.totalorder %v1239_v34, 200  ;;  %v1272_v62 = vadd.s32 %v1232_v26, %v512_v42  ;;  %v513_v63 = vadd.s32 96, %v1224_v15  ;;  %vm544_vm6 = vcmp.lt.s32.totalorder %v1252_v45, 200 }
  0x28   : > { %v1278_v2 = vadd.s32 %v1232_v26, %v502_v46  ;;  %v508_v3 = vadd.s32 56, %v1224_v15  ;;  %v516_v5 = vadd.s32 120, %v1224_v15  ;;  %v506_v6 = vadd.s32 40, %v1224_v15 }
  0x29   : > { %v514_v7 = vadd.s32 104, %v1224_v15  ;;  %v1289_v11 = vadd.s32 %v1232_v26, %v515_v57  ;;  %vm542_vm7 = vcmp.lt.s32.totalorder %v1258_v49, 200  ;;  %vm537_vm8 = vcmp.lt.s32.totalorder %v1264_v53, 200 }
  0x2a   : > { %vm545_vm9 = vcmp.lt.s32.totalorder %v1272_v62, 200  ;;  %vm535_vm10 = vcmp.lt.s32.totalorder %v1278_v2, 200 }
  0x2b   : > { %v1303_v23 = vadd.s32 %v1232_v26, %v514_v7 }
  0x2c   : > { %859 = vmatmul.mubr.msk.bf16.gmra.mxu0 %vm341_vm2, %v962_v9  ;;  %867 = vmatmul.mubr.msk.bf16.gmra.mxu1 %vm341_vm2, %v963_v10  ;;  %v1285_v9 = vadd.s32 %v1232_v26, %v510_v50  ;;  %v524_v10 = vadd.s32 %v1232_v26, %v507_v54 }
  0x2d   : > { %vm547_vm13 = vcmp.lt.s32.totalorder %v1303_v23, 200 }
  0x2e   : > { %vm543_vm11 = vcmp.lt.s32.totalorder %v1285_v9, 200  ;;  %vm540_vm12 = vcmp.lt.s32.totalorder %v524_v10, 200 }
  0xe4   : > { %v856_v13 = vpop.f32.mrf.mxu0  ;;  %v864_v16 = vpop.f32.mrf.mxu1 }
  0xe5   : > { %v413_v14 = vadd.f32 %v856_v13, %v1221_v12  ;;  %v445_v17 = vadd.f32 %v864_v16, %v1221_v12  ;;  %v1295_v16 = vadd.s32 %v1232_v26, %v513_v63 }
  0xe6   : > { %v404_v18 = vpop.f32.mrf.mxu0  ;;  %v436_v20 = vpop.f32.mrf.mxu1 }
  0xe7   : > { %964 = vtanh.f32 %v413_v14  ;;  %v405_v19 = vadd.f32 %v1221_v12, %v404_v18  ;;  %v437_v21 = vadd.f32 %v1221_v12, %v436_v20  ;;  %v525_v18 = vadd.s32 %v1232_v26, %v508_v3 }
  0xe8   : > { %966 = vtanh.f32 %v445_v17  ;;  %v857_v22 = vpop.f32.mrf.mxu0  ;;  %v865_v25 = vpop.f32.mrf.mxu1  ;;  %vm546_vm15 = vcmp.lt.s32.totalorder %v1295_v16, 200 }
  0xe9   : > { %968 = vtanh.f32 %v405_v19  ;;  %v416_v24 = vadd.f32 %v857_v22, %v1221_v12  ;;  %v448_v27 = vadd.f32 %v865_v25, %v1221_v12  ;;  %v523_v22 = vadd.s32 %v1232_v26, %v506_v6 }
  0xea   : > { %970 = vtanh.f32 %v437_v21  ;;  %v407_v28 = vpop.f32.mrf.mxu0  ;;  %v439_v30 = vpop.f32.mrf.mxu1  ;;  %v533_v21 = vadd.s32 %v1232_v26, %v516_v5  ;;  %vm541_vm0 = vcmp.lt.s32.totalorder %v525_v18, 200 }
  0xeb   : > { %972 = vtanh.f32 %v416_v24  ;;  %v408_v29 = vadd.f32 %v1221_v12, %v407_v28  ;;  %v440_v32 = vadd.f32 %v1221_v12, %v439_v30  ;;  %vm539_vm2 = vcmp.lt.s32.totalorder %v523_v22, 200 }
  0xec   : > { %974 = vtanh.f32 %v448_v27  ;;  %v860_v33 = vpop.f32.mrf.mxu0  ;;  %v868_v37 = vpop.f32.mrf.mxu1  ;;  %vm549_vm1 = vcmp.lt.s32.totalorder %v533_v21, 200 }
  0xed   : > { %976 = vtanh.f32 %v408_v29  ;;  %v429_v36 = vadd.f32 %v860_v33, %v1221_v12  ;;  %v461_v40 = vadd.f32 %v868_v37, %v1221_v12 }
  0xee   : > { %978 = vtanh.f32 %v440_v32  ;;  %v420_v41 = vpop.f32.mrf.mxu0  ;;  %v452_v44 = vpop.f32.mrf.mxu1 }
  0xef   : > { %980 = vtanh.f32 %v429_v36  ;;  %v421_v43 = vadd.f32 %v1221_v12, %v420_v41  ;;  %v453_v47 = vadd.f32 %v1221_v12, %v452_v44 }
  0xf0   : > { %982 = vtanh.f32 %v461_v40  ;;  %v861_v48 = vpop.f32.mrf.mxu0  ;;  %v869_v52 = vpop.f32.mrf.mxu1 }
  0xf1   : > { %984 = vtanh.f32 %v421_v43  ;;  %v432_v51 = vadd.f32 %v861_v48, %v1221_v12  ;;  %v464_v55 = vadd.f32 %v869_v52, %v1221_v12 }
  0xf2   : > { %986 = vtanh.f32 %v453_v47  ;;  %v423_v56 = vpop.f32.mrf.mxu0  ;;  %v455_v60 = vpop.f32.mrf.mxu1 }
  0xf3   : > { %988 = vtanh.f32 %v432_v51  ;;  %v424_v59 = vadd.f32 %v1221_v12, %v423_v56  ;;  %v456_v0 = vadd.f32 %v1221_v12, %v455_v60  ;;  %v522_v12 = vadd.s32 %v1232_v26, %v505_v58 }
  0xf4   : > { %v965_v61 = vpop.eup %964  ;;  %990 = vtanh.f32 %v464_v55 }
  0xf5   : > { %v967_v1 = vpop.eup %966  ;;  %992 = vtanh.f32 %v424_v59  ;;  %v485_v14 = vmax.f32 %v965_v61, 0.0  ;;  %vm538_vm14 = vcmp.lt.s32.totalorder %v522_v12, 200 }
  0xf6   : > { %v969_v4 = vpop.eup %968  ;;  %994 = vtanh.f32 %v456_v0  ;;  %v493_v28 = vmax.f32 %v967_v1, 0.0 }
  0xf7   : > { %v971_v8 = vpop.eup %970  ;;  %v483_v17 = vmax.f32 %v969_v4, 0.0  ;;  %v584_v27 = vsel %vm536_vm3, %v485_v14, -inf  ;;  %vm1419_vm3 = vcmp.lt.s32.totalorder %v1289_v11, 200 }
  0xf8   : > { %v973_v13 = vpop.eup %972  ;;  %v491_v29 = vmax.f32 %v971_v8, 0.0  ;;  %v602_v36 = vsel %vm599_vm5, %v584_v27, -inf  ;;  %v592_v41 = vsel %vm544_vm6, %v493_v28, -inf }
  0xf9   : > { %v975_v15 = vpop.eup %974  ;;  %v486_v20 = vmax.f32 %v973_v13, 0.0  ;;  %v582_v26 = vsel %vm534_vm4, %v483_v17, -inf  ;;  %v616_v0 = vsel %vm599_vm5, %v592_v41, -inf  ;;  %vm638_vm4 = vcmask 122880  }
  0xfa   : > { %v977_v19 = vpop.eup %976  ;;  %v494_v31 = vmax.f32 %v975_v15, 0.0  ;;  %v600_v42 = vsel %vm599_vm5, %v582_v26, -inf  ;;  %v590_v43 = vsel %vm542_vm7, %v491_v29, -inf }
  0xfb   : > { %v979_v24 = vpop.eup %978  ;;  %v585_v35 = vsel %vm537_vm8, %v486_v20, -inf  ;;  %v484_v37 = vmax.f32 %v977_v19, 0.0  ;;  %v612_v1 = vsel %vm599_vm5, %v590_v43, -inf }
  0xfc   : > { %v981_v25 = vpop.eup %980  ;;  %v603_v47 = vsel %vm599_vm5, %v585_v35, -inf  ;;  %v593_v48 = vsel %vm545_vm9, %v494_v31, -inf  ;;  %v492_v53 = vmax.f32 %v979_v24, 0.0  ;;  %v598_v35 = vld [vmem:[#allocation2] sm:$0x1] }
  0xfd   : > { %v983_v30 = vpop.eup %982  ;;  %v489_v32 = vmax.f32 %v981_v25, 0.0  ;;  %v583_v49 = vsel %vm535_vm10, %v484_v37, -inf  ;;  %v618_v3 = vsel %vm599_vm5, %v593_v48, -inf }
  0xfe   : > { %v985_v33 = vpop.eup %984  ;;  %v497_v45 = vmax.f32 %v983_v30, 0.0  ;;  %v591_v2 = vsel %vm543_vm11, %v492_v53, -inf  ;;  %v601_v8 = vsel %vm599_vm5, %v583_v49, -inf }
  0xff   : > { %v987_v34 = vpop.eup %986  ;;  %v588_v39 = vsel %vm540_vm12, %v489_v32, -inf  ;;  %v487_v40 = vmax.f32 %v985_v33, 0.0  ;;  %v614_v11 = vsel %vm599_vm5, %v591_v2, -inf }
 0x100   : > { %v989_v38 = vpop.eup %988  ;;  %v608_v44 = vsel %vm599_vm5, %v588_v39, -inf  ;;  %v495_v58 = vmax.f32 %v987_v34, 0.0  ;;  %v596_v5 = vsel %vm1419_vm3, %v497_v45, -inf }
 0x101   : > { %v991_v46 = vpop.eup %990  ;;  %v586_v50 = vsel %vm538_vm14, %v487_v40, -inf  ;;  %v490_v51 = vmax.f32 %v989_v38, 0.0  ;;  %v609_v57 = vmax.f32 %v602_v36, %v608_v44  ;;  %v624_v18 = vsel %vm599_vm5, %v596_v5, -inf }
 0x102   : > { %v993_v52 = vpop.eup %992  ;;  %v604_v54 = vsel %vm599_vm5, %v586_v50, -inf  ;;  %v498_v55 = vmax.f32 %v991_v46, 0.0  ;;  %v594_v10 = vsel %vm546_vm15, %v495_v58, -inf }
 0x103   : > { %v995_v56 = vpop.eup %994  ;;  %v589_v59 = vsel %vm541_vm0, %v490_v51, -inf  ;;  %v605_v60 = vmax.f32 %v600_v42, %v604_v54  ;;  %v488_v62 = vmax.f32 %v993_v52, 0.0  ;;  %v617_v14 = vmax.f32 %v609_v57, %v616_v0 }
 0x104   : > { %v610_v61 = vsel %vm599_vm5, %v589_v59, -inf  ;;  %v496_v63 = vmax.f32 %v995_v56, 0.0  ;;  %v597_v6 = vsel %vm549_vm1, %v498_v55, -inf  ;;  %v620_v16 = vsel %vm599_vm5, %v594_v10, -inf }
 0x105   : > { %v611_v4 = vmax.f32 %v603_v47, %v610_v61  ;;  %v587_v7 = vsel %vm539_vm2, %v488_v62, -inf  ;;  %v613_v15 = vmax.f32 %v605_v60, %v612_v1  ;;  %v626_v19 = vsel %vm599_vm5, %v597_v6, -inf }
 0x106   : > { %v606_v13 = vsel %vm599_vm5, %v587_v7, -inf  ;;  %v595_v9 = vsel %vm547_vm13, %v496_v63, -inf  ;;  %v625_v24 = vmax.f32 %v617_v14, %v624_v18 }
 0x107   : > { %v619_v12 = vmax.f32 %v611_v4, %v618_v3  ;;  %v607_v17 = vmax.f32 %v601_v8, %v606_v13  ;;  %v622_v22 = vsel %vm599_vm5, %v595_v9, -inf  ;;  %v621_v25 = vmax.f32 %v613_v15, %v620_v16 }
 0x109   : > { %v627_v20 = vmax.f32 %v619_v12, %v626_v19  ;;  %v615_v21 = vmax.f32 %v607_v17, %v614_v11 }
 0x10b   : > { %v623_v27 = vmax.f32 %v615_v21, %v622_v22  ;;  %v629_v28 = vmax.f32 %v625_v24, %v627_v20 }
 0x10d   : > { %v628_v29 = vmax.f32 %v621_v25, %v623_v27 }
 0x10f   : > { %v630_v30 = vmax.f32 %v628_v29, %v629_v28 }
 0x111   : > { %v631_v23 = vrot.slane %v630_v30, 4 }
 0x113   : > { %v632_v26 = vmax.f32 %v630_v30, %v631_v23 }
 0x115   : > { %v633_v31 = vrot.slane %v632_v26, 2 }
 0x117   : > { %v634_v32 = vmax.f32 %v632_v26, %v633_v31 }
 0x119   : > { %v635_v33 = vrot.slane %v634_v32, 1 }
 0x11b   : > { %v636_v34 = vmax.f32 %v634_v32, %v635_v33  ;;  %643 = sbr.rel (%p835_p1) target bundleno = 507 (0x1fb), region = 48 }
 0x11d   : > { %v637_v36 = vmax.f32 %v598_v35, %v636_v34 }
 0x11f   : > { %639 = vst.msk [vmem:[#allocation2] sm:$0x1] %vm638_vm4, %v637_v36 }
 0x120   : > { %v647_v37 = vld [vmem:[%s1414_s3 + $0x8] sm:$0xff]  ;;  %v1093_v40 = vmov 0.0   ;;  %v646_v38 = vld [vmem:[%s1414_s3] sm:$0xff]  ;;  %vm1094_vm6 = vmmov 0  }
 0x121   : > { %870 = vmatprep.subr.mxu0 %v1093_v40  ;;  %874 = vmatprep.mubr.msk.f32.mxu0 %vm1094_vm6, %v1093_v40  ;;  %v648_v42 = vld [vmem:[%s1415_s4] sm:$0x1] }
 0x122   : > { %871 = vmatpush3.msra.mxu0 %v647_v37 }
 0x123   : > { %872 = vmatprep.subr.mxu0 %v1093_v40 }
 0x124   : > { %873 = vmatpush3.msra.mxu0 %v646_v38 }
 0x126   : > { %v644_v39 = vld [vmem:[#allocation2] sm:$0x1] }
 0x127   : > { %v645_v41 = vmax.f32 %v644_v39, 0.0 }
 0x129   : > { %875 = vmatmul.mubr.msk.f32.vlgmr.msra.gmra.mxu0 %vm599_vm5, %v645_v41 }
 0x1e9   : > { %v718_v43 = vpop.f32.mrf.mxu0 }
 0x1ea   : > { %v719_v44 = vadd.f32 %v718_v43, %v648_v42 }
 0x1eb   : > { %v876_v46 = vpop.f32.mrf.mxu0 }
 0x1ec   : > { %996 = vtanh.f32 %v719_v44 }
 0x1f9   : > { %v997_v47 = vpop.eup %996 }
 0x1fa   : > { %723 = vst [vmem:[%s1204_s27] sm:$0x1] %v997_v47 }
 0x1fb PF: > { %s837_s7 = sshll.u32 %s1078_s22, 4  ;;  %s737_s13 = sshll.u32 %s1204_s27, 4  ;;  %s738_s13 = int_to_ptr.vmem [resolvable:$true] %s737_s13 }
 0x1fc   : > { %s735_s12 = scalar_lea.hbm %s1416_s5, %s837_s7  ;;  %s725_s14 = scalar_lea.sflag [#allocation4], %s250_s10 }
 0x1fd   : > { %s998_s15 = scalar_lea.vmem %s738_s13, 16  ;;  %s1095_s16 = smov [#allocation3]  }
 0x1fe   : > { %p999_p2 = scmp.ne.s32.totalorder %s738_s13, %s998_s15  ;;  %s1002_s17 = sshll.u32 %s1095_s16, 4  ;;  %s1003_s17 = int_to_ptr.vmem [resolvable:$false] %s1002_s17 }
 0x1ff   : > { %s1004_s21 = scalar_lea.vmem %s1003_s17, 32  ;;  %p1005_p6 = scmp.lt.s32.totalorder %s738_s13, %s1003_s17 }
 0x200   : > { %p1000_p4 = pnand %p999_p2, %p1175_p3  ;;  %p1006_p7 = scmp.lt.s32.totalorder %s1004_s21, %s998_s15 }
 0x202   : > { %p1001_p5 = pneg %p1000_p4  ;;  %p1007_p8 = por %p1006_p7, %p1005_p6 }
 0x204   : > { %p1008_p10 = pnand %p1007_p8, %p1001_p5 }
 0x206   : > { %1011 = shalt.err (!%p1008_p10)
}
 0x207   : > { %s1012_s22 = scalar_lea.hbm %s735_s12, 16  ;;  %s1016_s26 = scalar_lea.hbm %s1416_s5, 32 }
 0x208   : > { %p1013_p11 = scmp.ne.s32.totalorder %s735_s12, %s1012_s22  ;;  %p1017_p0 = scmp.lt.s32.totalorder %s735_s12, %s1416_s5 }
 0x209   : > { %p1018_p1 = scmp.lt.s32.totalorder %s1016_s26, %s1012_s22 }
 0x20a   : > { %p1014_p12 = pnand %p1013_p11, %p1175_p3 }
 0x20b   : > { %p1019_p2 = por %p1018_p1, %p1017_p0 }
 0x20c   : > { %p1015_p13 = pneg %p1014_p12 }
 0x20e   : > { %p1020_p4 = pnand %p1019_p2, %p1015_p13 }
 0x210   : > { %1023 = shalt.err (!%p1020_p4)
}
 0x211   : > { %882 = dma.vmem_to_hbm [thread:$0]  (%p1175_p3), %s738_s13, 16, %s735_s12, %s725_s14  }
 0x212 PF: > { %p888_p5 = scmp.ge.s32.totalorder %s1090_s25, 2  ;;  %s749_s11 = sand.u32 1, %s1062_s18  }
 0x213   : > { %s750_s15 = scalar_lea.sflag [#allocation4], %s749_s11 }
 0x214   : > { %p885_p6 = pnand %p888_p5, %p1185_p9 }
 0x216   : > { %p886_p7 = pneg %p885_p6 }
 0x218   : > { %1057 = dma.done.wait (%p886_p7), %s750_s15, 16  }
 0x219   : > { %1059 = vsyncadd (%p886_p7), %s750_s15, 4294967280  ;;  %s18_s25 = sadd.s32 1, %s1090_s25   ;;  %s1420_s18 = smov %s1066_s19 }
 0x21a   : > { %p15_p8 = scmp.ge.s32.totalorder %s18_s25, 6   ;;  %s1421_s19 = smov %s1070_s20 }
 0x21b   : > { %s1422_s20 = smov %s1193_s9  ;;  %s1423_s21 = smov %s1082_s23 }
 0x21c   : > { %s1424_s22 = smov %s1086_s24  ;;  %s1425_s23 = smov %s1428_s28 }
 0x21d   : > { %s1426_s24 = smov %s1432_s29  ;;  %17 = sbr.rel (!%p15_p8) target bundleno = 5 (0x5), region = 83 }
 0x222   :  { %754 = vsyncpa [#allocation4], 1 }
 0x223   :  { %756 = vsyncpa [#allocation4 + $0x1], 1 }

</bundles_post_ra>
